<compile_context>
chip_gen: v5e
topology: v5e:2x2
jax: 0.10.0
libtpu: 0.0.40
codegen_flags: <defaults>
</compile_context>

<pallas_src>
import jax
import jax.numpy as jnp
from jax.experimental import pallas as pl
from jax.experimental.pallas import tpu as pltpu

_LANES = 128
_SUBLANES = 8
_ALIGN = _SUBLANES * _LANES  # 1024-element alignment for the tiled main path


def _round_up(a, b):
    return ((a + b - 1) // b) * b


def _chip_caps():
    """Per-generation tiling knobs. Conservative for unknown/older chips."""
    try:
        kind = jax.devices()[0].device_kind.lower()
    except Exception:
        kind = ""
    newer = ("v6" in kind) or ("v7" in kind) or ("7x" in kind)
    if newer:
        # 8192 x 128 f32 = 4 MiB/buffer; ~16 MiB live with double-buffered
        # in+out -> fits the 32 MiB scoped-VMEM default on v6e/v7x (v7x has
        # only 64 MiB physical, so we stop here). bf16 VPU/EUP available.
        return 8192, 32 * 1024 * 1024, True
    # v5e (and unknown): 16 MiB scoped-VMEM default, no bf16 VPU/EUP.
    # 4096 x 128 f32 = 2 MiB/buffer, ~8 MiB live — already at the roofline.
    return 4096, 16 * 1024 * 1024, False


def _make_kernel(compute_dtype):
    def kernel(mean_ref, coeff_ref, neg_inv2sd2_ref, x_ref, o_ref):
        # SMEM scalars, read once per grid step.
        mean = mean_ref[0].astype(compute_dtype)
        coeff = coeff_ref[0].astype(compute_dtype)
        neg_inv2sd2 = neg_inv2sd2_ref[0].astype(compute_dtype)
        x = x_ref[...].astype(compute_dtype)          # no-op when dtypes match
        d = x - mean
        # exp lands on the EUP slot; the multiplies stay on the VPU.
        o_ref[...] = (coeff * jnp.exp(d * d * neg_inv2sd2)).astype(o_ref.dtype)
    return kernel


def tunable_gaussian(x, mean, sd, *, xla_fallback_max_elems=0):
    """Elementwise tunable Gaussian (matches the PyTorch forward exactly).

    x:    any-shape float array (e.g. NCHW (B, C, H, W)); I/O stays in x.dtype.
    mean: shape (1,) float
    sd:   shape (1,) float
    xla_fallback_max_elems: if x.size <= this, skip the pallas_call and let
        XLA fuse the elementwise expression (kernel launch overhead dominates
        sub-microsecond HBM time for a few-KiB tensors). Default 0 (disabled).
    """
    orig_shape = x.shape
    orig_dtype = x.dtype
    n = x.size

    # Exact scalar precompute (tiny XLA ops on (1,)-arrays; no approx recip).
    mean32 = jnp.asarray(mean, jnp.float32).reshape(1)
    sd32 = jnp.asarray(sd, jnp.float32).reshape(1)
    coeff = 1.0 / jnp.sqrt(2.0 * jnp.pi * sd32)        # matches torch: sqrt(2*pi*sd)
    neg_inv2sd2 = -1.0 / (2.0 * sd32 * sd32)

    if n <= xla_fallback_max_elems:
        xf = x.astype(jnp.float32)
        return (coeff[0] * jnp.exp((xf - mean32[0]) ** 2 * neg_inv2sd2[0])
                ).astype(orig_dtype).reshape(orig_shape)

    max_rows, vmem_limit, bf16_ok = _chip_caps()
    compute_dtype = jnp.float32
    if bf16_ok and orig_dtype == jnp.bfloat16:
        compute_dtype = jnp.bfloat16                   # keep VALU at 2x elem/cycle
    kernel = _make_kernel(compute_dtype)

    smem_spec = pl.BlockSpec(memory_space=pltpu.MemorySpace.SMEM)
    vmem_spec = pl.BlockSpec(memory_space=pltpu.MemorySpace.VMEM)

    # Split into a 1024-aligned prefix (tiled, pipelined kernel) and a <=1023
    # element ragged tail (single full-extent block). No jnp.pad and no output
    # slice -> no extra full HBM passes on the unaligned path.
    x_flat = jnp.reshape(x, (-1,))
    n_main = (n // _ALIGN) * _ALIGN
    n_tail = n - n_main

    parts = []

    if n_main:
        rows = n_main // _LANES                        # multiple of 8
        x2d = jnp.reshape(x_flat[:n_main], (rows, _LANES))

        if rows <= 64:
            # Tiny input: a single block; launch overhead dominates anyway.
            tile_rows = rows
        else:
            # >=~4-8 grid steps -> pipelining + both v7x TensorCores get work;
            # capped per-generation so buffers fit scoped VMEM.
            tile_rows = min(max_rows, max(_SUBLANES,
                                          _round_up(pl.cdiv(rows, 8), _SUBLANES)))
        grid = (pl.cdiv(rows, tile_rows),)

        out2d = pl.pallas_call(
            kernel,
            out_shape=jax.ShapeDtypeStruct((rows, _LANES), orig_dtype),
            grid=grid,
            in_specs=[
                smem_spec,                                         # mean
                smem_spec,                                         # coeff
                smem_spec,                                         # -1/(2 sd^2)
                pl.BlockSpec((tile_rows, _LANES), lambda i: (i, 0)),  # x tile
            ],
            out_specs=pl.BlockSpec((tile_rows, _LANES), lambda i: (i, 0)),
            compiler_params=pltpu.CompilerParams(
                dimension_semantics=("parallel",),
                vmem_limit_bytes=vmem_limit,
            ),
        )(mean32, coeff, neg_inv2sd2, x2d)
        parts.append(jnp.reshape(out2d, (-1,)))

    if n_tail:
        # Ragged tail: full-extent (1, n_tail) block (block == full array dims
        # is always legal), single invocation.
        x_tail = jnp.reshape(x_flat[n_main:], (1, n_tail))
        out_tail = pl.pallas_call(
            kernel,
            out_shape=jax.ShapeDtypeStruct((1, n_tail), orig_dtype),
            in_specs=[smem_spec, smem_spec, smem_spec, vmem_spec],
            out_specs=vmem_spec,
        )(mean32, coeff, neg_inv2sd2, x_tail)
        parts.append(jnp.reshape(out_tail, (-1,)))

    out_flat = parts[0] if len(parts) == 1 else jnp.concatenate(parts)
    return jnp.reshape(out_flat, orig_shape)


def tunable_gaussian_ref(x, mean, sd):
    # pure-JAX reference (mirrors the PyTorch forward exactly; preserves dtype)
    xf = x.astype(jnp.float32)
    m = jnp.asarray(mean, jnp.float32)
    s = jnp.asarray(sd, jnp.float32)
    out = 1.0 / jnp.sqrt(2.0 * jnp.pi * s) * jnp.exp(-(xf - m) ** 2 / (2.0 * s ** 2))
    return out.astype(x.dtype)


if __name__ == "__main__":
    key = jax.random.PRNGKey(0)
    k_x, k_mean, k_sd, k_x2, k_x3 = jax.random.split(key, 5)

    # deterministic parameter init (torch.rand(1) -> uniform [0, 1))
    mean = jax.random.uniform(k_mean, (1,), dtype=jnp.float32)
    sd = jax.random.uniform(k_sd, (1,), dtype=jnp.float32)

    # main NCHW input, consistent with the GoL conv-pipeline context (aligned)
    x = jax.random.normal(k_x, (2, 4, 16, 16), dtype=jnp.float32)
    out = jax.block_until_ready(tunable_gaussian(x, mean, sd))
    ref = tunable_gaussian_ref(x, mean, sd)
    assert out.shape == x.shape, (out.shape, x.shape)
    assert jnp.allclose(out, ref, rtol=1e-5, atol=1e-5), "mismatch vs reference"

    # non-aligned input exercising the ragged-tail (full-extent block) path
    x2 = jax.random.normal(k_x2, (3, 5, 7, 9), dtype=jnp.float32)
    out2 = jax.block_until_ready(tunable_gaussian(x2, mean, sd))
    ref2 = tunable_gaussian_ref(x2, mean, sd)
    assert out2.shape == x2.shape, (out2.shape, x2.shape)
    assert jnp.allclose(out2, ref2, rtol=1e-5, atol=1e-5), "mismatch (ragged)"

    # larger aligned input exercising the multi-block pipelined/parallel grid
    x3 = jax.random.normal(k_x3, (2, 4, 64, 64), dtype=jnp.float32)
    out3 = jax.block_until_ready(tunable_gaussian(x3, mean, sd))
    ref3 = tunable_gaussian_ref(x3, mean, sd)
    assert out3.shape == x3.shape, (out3.shape, x3.shape)
    assert jnp.allclose(out3, ref3, rtol=1e-5, atol=1e-5), "mismatch (multi-block)"

    print("KERNEL_OK")
</pallas_src>

<mosaic_0001>
module attributes {stable_mosaic.version = 11 : i64} {
  func.func @kernel(%arg0: i32, %arg1: memref<1xf32, #tpu.memory_space<smem>>, %arg2: memref<1xf32, #tpu.memory_space<smem>>, %arg3: memref<1xf32, #tpu.memory_space<smem>>, %arg4: memref<16x128xf32, #tpu.memory_space<vmem>>, %arg5: memref<16x128xf32, #tpu.memory_space<vmem>>) attributes {dimension_semantics = [#tpu.dimension_semantics<parallel>], iteration_bounds = array<i64: 1>, scalar_prefetch = 0 : i64, scratch_operands = 0 : i64, tpu.core_type = #tpu.core_type<tc>, window_params = [{transform_indices = @transform_0, window_bounds = array<i64: 1>}, {transform_indices = @transform_1, window_bounds = array<i64: 1>}, {transform_indices = @transform_2, window_bounds = array<i64: 1>}, {transform_indices = @transform_3, window_bounds = array<i64: 16, 128>}, {transform_indices = @transform_4, window_bounds = array<i64: 16, 128>}]} {
    %c0 = arith.constant 0 : index
    %0 = memref.load %arg1[%c0] : memref<1xf32, #tpu.memory_space<smem>>
    %c0_0 = arith.constant 0 : index
    %1 = memref.load %arg2[%c0_0] : memref<1xf32, #tpu.memory_space<smem>>
    %c0_1 = arith.constant 0 : index
    %2 = memref.load %arg3[%c0_1] : memref<1xf32, #tpu.memory_space<smem>>
    %c0_2 = arith.constant 0 : index
    %c0_3 = arith.constant 0 : index
    %3 = vector.load %arg4[%c0_2, %c0_3] : memref<16x128xf32, #tpu.memory_space<vmem>>, vector<16x128xf32>
    %4 = vector.broadcast %0 : f32 to vector<16x128xf32>
    %5 = arith.subf %3, %4 : vector<16x128xf32>
    %6 = arith.mulf %5, %5 : vector<16x128xf32>
    %7 = vector.broadcast %2 : f32 to vector<16x128xf32>
    %8 = arith.mulf %6, %7 : vector<16x128xf32>
    %9 = math.exp %8 : vector<16x128xf32>
    %10 = vector.broadcast %1 : f32 to vector<16x128xf32>
    %11 = arith.mulf %10, %9 : vector<16x128xf32>
    %c0_4 = arith.constant 0 : index
    %c0_5 = arith.constant 0 : index
    %12 = vector.load %arg5[%c0_4, %c0_5] : memref<16x128xf32, #tpu.memory_space<vmem>>, vector<16x128xf32>
    tpu.vector_store %arg5[%c0_4, %c0_5], %11 {strides = array<i32>} : memref<16x128xf32, #tpu.memory_space<vmem>>, vector<16x128xf32>,
    return
  }
  func.func @transform_0(%arg0: i32) -> i32 {
    %c0_i32 = arith.constant 0 : i32
    %c0_i32_0 = arith.constant 0 : i32
    return %c0_i32 : i32
  }
  func.func @transform_1(%arg0: i32) -> i32 {
    %c0_i32 = arith.constant 0 : i32
    %c0_i32_0 = arith.constant 0 : i32
    return %c0_i32 : i32
  }
  func.func @transform_2(%arg0: i32) -> i32 {
    %c0_i32 = arith.constant 0 : i32
    %c0_i32_0 = arith.constant 0 : i32
    return %c0_i32 : i32
  }
  func.func @transform_3(%arg0: i32) -> (i32, i32) {
    %c0_i32 = arith.constant 0 : i32
    %c0_i32_0 = arith.constant 0 : i32
    return %arg0, %c0_i32 : i32, i32
  }
  func.func @transform_4(%arg0: i32) -> (i32, i32) {
    %c0_i32 = arith.constant 0 : i32
    %c0_i32_0 = arith.constant 0 : i32
    return %arg0, %c0_i32 : i32, i32
  }
}

</mosaic_0001>

<bundles_post_ra>
// kernel: tpu_custom_call.1
= control target key start
LH: loop header
LB: loop body
LE: loop exit
PB: predicated region body
PF: predicated region fallthrough
CT: control target
= control target key end

     0   :  { %12 = vsyncpa [#allocation6], 0  ;;  %s188_s0 = inlined_call_operand.<no memory space> [shape: f32[1], index: 0, kind: input, shape index: {}]   ;;  %s189_s1 = inlined_call_operand.<no memory space> [shape: f32[1], index: 1, kind: input, shape index: {}]   ;;  %s190_s2 = inlined_call_operand.<no memory space> [shape: f32[1], index: 2, kind: input, shape index: {}]   ;;  %s191_s3 = inlined_call_operand.hbm [shape: f32[16,128], index: 3, kind: input, shape index: {}]   ;;  %s192_s4 = inlined_call_operand.hbm [shape: f32[16,128], index: 4, kind: output, shape index: {}]  }
   0x1   :  { %13 = vsyncpa [#allocation7], 0  ;;  %s24_s17 = sshll.u32 %s191_s3, 4  ;;  %s138_s18 = smov [#allocation5]   ;;  %s25_s17 = int_to_ptr.hbm [resolvable:$true] %s24_s17 }
   0x2   :  { %s26_s19 = sshll.u32 %s138_s18, 4  ;;  %s139_s20 = smov 128   ;;  %s27_s19 = int_to_ptr.vmem [resolvable:$true] %s26_s19 }
   0x3   :  { %s140_s21 = smov 8  }
   0x4   :  { %32 = dma.hbm_to_vmem [thread:$0]  %s25_s17, 256, %s27_s19, [#allocation6], %s139_s20, %s139_s20, %s140_s21  }
   0x5   :  { %134 = dma.done.wait [#allocation6], 256  }
   0x6   :  { %135 = vsyncadd [#allocation6], 4294967040  ;;  %v42_v0 = vstv %s188_s0  ;;  %v40_v1 = vld [vmem:[#allocation5] sm:$0xff]  ;;  %v41_v2 = vld [vmem:[#allocation5 + $0x8] sm:$0xff]  ;;  %v47_v5 = vstv %s190_s2  ;;  %v54_v12 = vstv %s189_s1  ;;  %s141_s0 = smov [#allocation8]   ;;  %s65_s30 = sshll.u32 %s192_s4, 4  ;;  %s66_s30 = int_to_ptr.hbm [resolvable:$true] %s65_s30 }
   0x7   :  { %v43_v3 = vsub.f32 %v40_v1, %v42_v0  ;;  %v44_v4 = vsub.f32 %v41_v2, %v42_v0  ;;  %s63_s27 = sshll.u32 %s141_s0, 4  ;;  %s64_s27 = int_to_ptr.vmem [resolvable:$true] %s63_s27 }
   0x9   :  { %v45_v6 = vmul.f32 %v43_v3, %v43_v3  ;;  %v46_v7 = vmul.f32 %v44_v4, %v44_v4 }
   0xb   :  { %v48_v8 = vmul.f32 %v47_v5, %v45_v6  ;;  %v49_v9 = vmul.f32 %v47_v5, %v46_v7 }
   0xd   :  { %v50_v10 = vmul.f32 1.442695, %v48_v8  ;;  %v52_v11 = vmul.f32 1.442695, %v49_v9 }
   0xf   :  { %82 = vpow2.f32 %v50_v10 }
  0x10   :  { %84 = vpow2.f32 %v52_v11 }
  0x15   :  { %v83_v13 = vpop.eup %82 }
  0x16   :  { %v85_v14 = vpop.eup %84  ;;  %v55_v15 = vmul.f32 %v83_v13, %v54_v12 }
  0x17   :  { %v56_v16 = vmul.f32 %v85_v14, %v54_v12 }
  0x18   :  { %57 = vst [vmem:[#allocation8] sm:$0xff] %v55_v15 }
  0x19   :  { %58 = vst [vmem:[#allocation8 + $0x8] sm:$0xff] %v56_v16 }
  0x1a   :  { %71 = dma.vmem_to_hbm [thread:$0]  %s64_s27, 256, %s66_s30, [#allocation7], %s139_s20, %s139_s20, %s140_s21  }
  0x1b   :  { %136 = dma.done.wait [#allocation7], 256  }
  0x1c   :  { %137 = vsyncadd [#allocation7], 4294967040 }
  0x1d   :  { %76 = vsyncpa [#allocation6], 1 }
  0x1e   :  { %77 = vsyncpa [#allocation7], 1 }

</bundles_post_ra>
